<compile_context>
chip_gen: v5e
topology: v5e:2x2
jax: 0.10.0
libtpu: 0.0.40
codegen_flags: <defaults>
</compile_context>

<pallas_src>
import functools

import jax
import jax.numpy as jnp
from jax.experimental import pallas as pl
from jax.experimental.pallas import tpu as pltpu


def _leaky_relu(x, negative_slope=0.01):
    # max(x, a*x) == LeakyReLU for 0 <= a <= 1: 2 VALU ops vs cmp+mul+select.
    return jnp.maximum(x, negative_slope * x)


def _round_up(v, m):
    return (v + m - 1) // m * m


@functools.lru_cache(maxsize=1)
def _num_tensorcores():
    """Best-effort TensorCores-per-chip (2 on v7x / megacore chips, else 1)."""
    try:
        info = pltpu.get_tpu_info()
        for attr in ("num_tensorcores", "tensorcores_per_chip",
                     "num_cores", "cores_per_chip"):
            v = getattr(info, attr, None)
            if isinstance(v, int) and v > 1:
                return v
    except Exception:
        pass
    try:
        kind = jax.devices()[0].device_kind.lower()
        if "7" in kind or "v4" in kind:
            return 2
    except Exception:
        pass
    return 1


def mlp_kernel(x_ref, w1_ref, b1_ref, w2_ref, b2_ref, w3_ref, b3_ref, w4_ref,
               o_ref):
    # bf16 or f32 operands go straight to the MXU; accumulation stays f32, so
    # bias + LeakyReLU remain f32 VPU ops (safe on v5e, which lacks bf16 VALU).
    x = x_ref[...]

    h = jnp.dot(x, w1_ref[...], preferred_element_type=jnp.float32) + b1_ref[...]
    h = _leaky_relu(h)
    # Dropout -> identity (inference)

    h = jnp.dot(h, w2_ref[...], preferred_element_type=jnp.float32) + b2_ref[...]
    h = _leaky_relu(h)

    h = jnp.dot(h, w3_ref[...], preferred_element_type=jnp.float32) + b3_ref[...]
    h = _leaky_relu(h)

    # Final Linear(E//6 -> 1, bias=False): only E//6 MACs per row, so keep it
    # off the MXU.  Transpose the small (bm, d3) tile, multiply by the weight
    # column (broadcast over lanes) and reduce over sublanes, which yields the
    # lane-dense (1, bm) row needed for the wide output store.
    ht = h.T                                                         # (d3, bm)
    w4 = w4_ref[...].astype(jnp.float32)                             # (d3, 1)
    z = jnp.sum(ht * w4, axis=0, keepdims=True)                      # (1, bm)

    # Sigmoid: exp on the EUP; approximate reciprocal also uses the EUP slot.
    o = pl.reciprocal(1.0 + jnp.exp(-z), approx=True)
    o_ref[...] = o.reshape(o_ref.shape).astype(o_ref.dtype)


@functools.partial(jax.jit, static_argnames=("block_m",))
def mlp_forward(x, params, *, block_m=2048):
    """x: (N, E) float32 or bfloat16.  Returns (N, 1) float32 predictions."""
    n, e = x.shape
    w1, b1, w2, b2, w3, b3, w4 = (params["w1"], params["b1"], params["w2"],
                                  params["b2"], params["w3"], params["b3"],
                                  params["w4"])

    # Batch tile:
    #  * large default (2048 rows) amortizes the ~0.35us fixed per-grid-step
    #    overhead; double-buffered x tiles stay a few MiB, so VMEM is never the
    #    constraint on v5e/v6e/v7x;
    #  * rounded up to a multiple of 128 so the (1, bm) output row stays
    #    lane-dense (unmasked full-lane stores);
    #  * split into >= num_tc "parallel" steps only on 2-TensorCore chips
    #    (v7x); on 1-TC chips a single tile avoids an overhead-only step.
    num_tc = _num_tensorcores()
    bm = min(block_m, _round_up(pl.cdiv(n, num_tc), 128))
    bm = max(bm, 128)
    grid = (pl.cdiv(n, bm),)

    # NOTE: no wrapper-side jnp.pad.  If bm does not divide N, the last x block
    # is partial: its tail rows are undefined on read, but every row is
    # computed independently and the final [:n] slice drops them.  This avoids
    # an extra full HBM read+write pass over x.

    def resident_spec(shape):
        # Constant index_map: same block on every grid step, so the (tiny)
        # weight/bias stays resident in VMEM — no per-step DMA.
        return pl.BlockSpec(shape, lambda i: (0,) * len(shape))

    out = pl.pallas_call(
        mlp_kernel,
        # Lane-dense output slab (last dim = bm), pinned to f32 regardless of
        # the (possibly bf16) input dtype.
        out_shape=jax.ShapeDtypeStruct((grid[0], 1, bm), jnp.float32),
        grid_spec=pltpu.PrefetchScalarGridSpec(
            num_scalar_prefetch=0,
            grid=grid,
            in_specs=[
                pl.BlockSpec((bm, e), lambda i: (i, 0)),   # x tile
                resident_spec(w1.shape), resident_spec(b1.shape),
                resident_spec(w2.shape), resident_spec(b2.shape),
                resident_spec(w3.shape), resident_spec(b3.shape),
                resident_spec(w4.shape),
            ],
            out_specs=pl.BlockSpec((1, 1, bm), lambda i: (i, 0, 0)),
        ),
        compiler_params=pltpu.CompilerParams(
            dimension_semantics=("parallel",)),
    )(x, w1, b1, w2, b2, w3, b3, w4)

    # (grid, 1, bm) lane-dense slab -> (N, 1) column, dropping the tail rows.
    return out.reshape(grid[0] * bm, 1)[:n]


def _xavier_uniform(key, fan_in, fan_out, dtype=jnp.float32):
    # matches torch.nn.init.xavier_uniform_ bound; stored as (in, out)
    bound = (6.0 / (fan_in + fan_out)) ** 0.5
    return jax.random.uniform(key, (fan_in, fan_out), dtype,
                              minval=-bound, maxval=bound)


def init_params(key, embedding_size):
    e = embedding_size
    d1, d2, d3 = e // 2, e // 4, e // 6
    k1, k2, k3, k4 = jax.random.split(key, 4)
    return {
        "w1": _xavier_uniform(k1, e, d1),
        "b1": jnp.zeros((1, d1), jnp.float32),   # nn.init.constant_(bias, 0)
        "w2": _xavier_uniform(k2, d1, d2),
        "b2": jnp.zeros((1, d2), jnp.float32),
        "w3": _xavier_uniform(k3, d2, d3),
        "b3": jnp.zeros((1, d3), jnp.float32),
        "w4": _xavier_uniform(k4, d3, 1),        # final Linear has bias=False
    }


def mlp_reference(x, params):
    h = _leaky_relu(x @ params["w1"] + params["b1"])
    h = _leaky_relu(h @ params["w2"] + params["b2"])
    h = _leaky_relu(h @ params["w3"] + params["b3"])
    return jax.nn.sigmoid(h @ params["w4"])


if __name__ == "__main__":
    embedding_size = 48        # divisible by 2, 4, 6
    key = jax.random.PRNGKey(0)
    kx, kp = jax.random.split(key)
    params = init_params(kp, embedding_size)

    # Tolerance is looser than 1e-5 because the sigmoid uses the EUP
    # approximate reciprocal (pl.reciprocal(approx=True), ~1e-3 output error);
    # any structural bug (wrong slope / bias / layer wiring) blows far past it.
    tol = dict(atol=5e-3, rtol=5e-3)

    # Case 1: batch of 256 -> one 256-row tile on 1-TC chips, or two 128-row
    # "parallel" tiles on 2-TC chips (v7x).
    batch = 256
    x = jax.random.normal(kx, (batch, embedding_size), jnp.float32)
    out = jax.block_until_ready(mlp_forward(x, params))
    ref = mlp_reference(x, params)
    assert out.shape == (batch, 1), out.shape
    assert out.dtype == jnp.float32, out.dtype
    assert jnp.allclose(out, ref, **tol), "mismatch vs reference (batch=256)"

    # Case 2: small ragged batch (100) exercises the partial-last-block path
    # (no wrapper-side jnp.pad; tail rows of the tile are undefined & dropped).
    x2 = jax.random.normal(jax.random.PRNGKey(1), (100, embedding_size),
                           jnp.float32)
    out2 = jax.block_until_ready(mlp_forward(x2, params))
    ref2 = mlp_reference(x2, params)
    assert out2.shape == (100, 1), out2.shape
    assert jnp.allclose(out2, ref2, **tol), "mismatch vs reference (batch=100)"

    # Case 3: bf16 activations + weights (halves the dominant HBM stream);
    # biases stay f32 and the output dtype is pinned to f32.
    params_bf16 = {k: (v.astype(jnp.bfloat16) if k.startswith("w") else v)
                   for k, v in params.items()}
    out3 = jax.block_until_ready(mlp_forward(x.astype(jnp.bfloat16),
                                             params_bf16))
    assert out3.shape == (batch, 1), out3.shape
    assert out3.dtype == jnp.float32, out3.dtype
    assert jnp.allclose(out3, ref, atol=3e-2, rtol=3e-2), \
        "mismatch vs reference (bf16 inputs)"

    print("KERNEL_OK")
</pallas_src>

<mosaic_0001>
module attributes {stable_mosaic.version = 11 : i64} {
  func.func @mlp_kernel(%arg0: i32, %arg1: memref<256x48xf32, #tpu.memory_space<vmem>>, %arg2: memref<48x24xf32, #tpu.memory_space<vmem>>, %arg3: memref<1x24xf32, #tpu.memory_space<vmem>>, %arg4: memref<24x12xf32, #tpu.memory_space<vmem>>, %arg5: memref<1x12xf32, #tpu.memory_space<vmem>>, %arg6: memref<12x8xf32, #tpu.memory_space<vmem>>, %arg7: memref<1x8xf32, #tpu.memory_space<vmem>>, %arg8: memref<8x1xf32, #tpu.memory_space<vmem>>, %arg9: memref<1x1x256xf32, #tpu.memory_space<vmem>>) attributes {dimension_semantics = [#tpu.dimension_semantics<parallel>], iteration_bounds = array<i64: 1>, scalar_prefetch = 0 : i64, scratch_operands = 0 : i64, tpu.core_type = #tpu.core_type<tc>, window_params = [{transform_indices = @transform_0, window_bounds = array<i64: 256, 48>}, {pipeline_mode = #tpu.pipeline_mode<synchronous>, transform_indices = @transform_1, window_bounds = array<i64: 48, 24>}, {pipeline_mode = #tpu.pipeline_mode<synchronous>, transform_indices = @transform_2, window_bounds = array<i64: 1, 24>}, {pipeline_mode = #tpu.pipeline_mode<synchronous>, transform_indices = @transform_3, window_bounds = array<i64: 24, 12>}, {pipeline_mode = #tpu.pipeline_mode<synchronous>, transform_indices = @transform_4, window_bounds = array<i64: 1, 12>}, {pipeline_mode = #tpu.pipeline_mode<synchronous>, transform_indices = @transform_5, window_bounds = array<i64: 12, 8>}, {pipeline_mode = #tpu.pipeline_mode<synchronous>, transform_indices = @transform_6, window_bounds = array<i64: 1, 8>}, {pipeline_mode = #tpu.pipeline_mode<synchronous>, transform_indices = @transform_7, window_bounds = array<i64: 8, 1>}, {transform_indices = @transform_8, window_bounds = array<i64: 1, 1, 256>}]} {
    %c0 = arith.constant 0 : index
    %c0_0 = arith.constant 0 : index
    %0 = vector.load %arg1[%c0, %c0_0] : memref<256x48xf32, #tpu.memory_space<vmem>>, vector<256x48xf32>
    %c0_1 = arith.constant 0 : index
    %c0_2 = arith.constant 0 : index
    %1 = vector.load %arg2[%c0_1, %c0_2] : memref<48x24xf32, #tpu.memory_space<vmem>>, vector<48x24xf32>
    %cst = arith.constant dense<0.000000e+00> : vector<256x24xf32>
    %2 = tpu.matmul %0, %1, %cst {dimension_numbers = #tpu.dot_dimension_numbers<[1], [0], [0], [1], [0, 0, 1, 1], [], []>} : vector<256x48xf32>, vector<48x24xf32>, vector<256x24xf32> -> vector<256x24xf32>
    %c0_3 = arith.constant 0 : index
    %c0_4 = arith.constant 0 : index
    %3 = vector.load %arg3[%c0_3, %c0_4] : memref<1x24xf32, #tpu.memory_space<vmem>>, vector<1x24xf32>
    %4 = vector.broadcast %3 : vector<1x24xf32> to vector<256x24xf32>
    %5 = arith.addf %2, %4 : vector<256x24xf32>
    %cst_5 = arith.constant 0.00999999977 : f32
    %6 = vector.broadcast %cst_5 : f32 to vector<256x24xf32>
    %7 = arith.mulf %6, %5 : vector<256x24xf32>
    %8 = arith.maximumf %5, %7 : vector<256x24xf32>
    %c0_6 = arith.constant 0 : index
    %c0_7 = arith.constant 0 : index
    %9 = vector.load %arg4[%c0_6, %c0_7] : memref<24x12xf32, #tpu.memory_space<vmem>>, vector<24x12xf32>
    %cst_8 = arith.constant dense<0.000000e+00> : vector<256x12xf32>
    %10 = tpu.matmul %8, %9, %cst_8 {dimension_numbers = #tpu.dot_dimension_numbers<[1], [0], [0], [1], [0, 0, 1, 1], [], []>} : vector<256x24xf32>, vector<24x12xf32>, vector<256x12xf32> -> vector<256x12xf32>
    %c0_9 = arith.constant 0 : index
    %c0_10 = arith.constant 0 : index
    %11 = vector.load %arg5[%c0_9, %c0_10] : memref<1x12xf32, #tpu.memory_space<vmem>>, vector<1x12xf32>
    %12 = vector.broadcast %11 : vector<1x12xf32> to vector<256x12xf32>
    %13 = arith.addf %10, %12 : vector<256x12xf32>
    %cst_11 = arith.constant 0.00999999977 : f32
    %14 = vector.broadcast %cst_11 : f32 to vector<256x12xf32>
    %15 = arith.mulf %14, %13 : vector<256x12xf32>
    %16 = arith.maximumf %13, %15 : vector<256x12xf32>
    %c0_12 = arith.constant 0 : index
    %c0_13 = arith.constant 0 : index
    %17 = vector.load %arg6[%c0_12, %c0_13] : memref<12x8xf32, #tpu.memory_space<vmem>>, vector<12x8xf32>
    %cst_14 = arith.constant dense<0.000000e+00> : vector<256x8xf32>
    %18 = tpu.matmul %16, %17, %cst_14 {dimension_numbers = #tpu.dot_dimension_numbers<[1], [0], [0], [1], [0, 0, 1, 1], [], []>} : vector<256x12xf32>, vector<12x8xf32>, vector<256x8xf32> -> vector<256x8xf32>
    %c0_15 = arith.constant 0 : index
    %c0_16 = arith.constant 0 : index
    %19 = vector.load %arg7[%c0_15, %c0_16] : memref<1x8xf32, #tpu.memory_space<vmem>>, vector<1x8xf32>
    %20 = vector.broadcast %19 : vector<1x8xf32> to vector<256x8xf32>
    %21 = arith.addf %18, %20 : vector<256x8xf32>
    %cst_17 = arith.constant 0.00999999977 : f32
    %22 = vector.broadcast %cst_17 : f32 to vector<256x8xf32>
    %23 = arith.mulf %22, %21 : vector<256x8xf32>
    %24 = arith.maximumf %21, %23 : vector<256x8xf32>
    %25 = tpu.transpose %24, [1, 0] : vector<256x8xf32> -> vector<8x256xf32>
    %c0_18 = arith.constant 0 : index
    %c0_19 = arith.constant 0 : index
    %26 = vector.load %arg8[%c0_18, %c0_19] : memref<8x1xf32, #tpu.memory_space<vmem>>, vector<8x1xf32>
    %27 = vector.broadcast %26 : vector<8x1xf32> to vector<8x256xf32>
    %28 = arith.mulf %25, %27 : vector<8x256xf32>
    %cst_20 = arith.constant dense<0.000000e+00> : vector<256xf32>
    %29 = vector.multi_reduction <add>, %28, %cst_20 [0] : vector<8x256xf32> to vector<256xf32>
    %30 = vector.shape_cast %29 : vector<256xf32> to vector<1x256xf32>
    %cst_21 = arith.constant 0.000000e+00 : f32
    %31 = vector.broadcast %cst_21 : f32 to vector<1x256xf32>
    %32 = arith.subf %31, %30 : vector<1x256xf32>
    %33 = math.exp %32 : vector<1x256xf32>
    %cst_22 = arith.constant 1.000000e+00 : f32
    %34 = vector.broadcast %cst_22 : f32 to vector<1x256xf32>
    %35 = arith.addf %34, %33 : vector<1x256xf32>
    %36 = tpu.reciprocal %35 {approx = true} : vector<1x256xf32> -> vector<1x256xf32>
    %37 = vector.shape_cast %36 : vector<1x256xf32> to vector<1x1x256xf32>
    %c0_23 = arith.constant 0 : index
    %c0_24 = arith.constant 0 : index
    %c0_25 = arith.constant 0 : index
    %38 = vector.load %arg9[%c0_23, %c0_24, %c0_25] : memref<1x1x256xf32, #tpu.memory_space<vmem>>, vector<1x1x256xf32>
    tpu.vector_store %arg9[%c0_23, %c0_24, %c0_25], %37 {strides = array<i32>} : memref<1x1x256xf32, #tpu.memory_space<vmem>>, vector<1x1x256xf32>,
    return
  }
  func.func @transform_0(%arg0: i32) -> (i32, i32) {
    %c0_i32 = arith.constant 0 : i32
    %c0_i32_0 = arith.constant 0 : i32
    return %arg0, %c0_i32 : i32, i32
  }
  func.func @transform_1(%arg0: i32) -> (i32, i32) {
    %c0_i32 = arith.constant 0 : i32
    %c0_i32_0 = arith.constant 0 : i32
    %c0_i32_1 = arith.constant 0 : i32
    return %c0_i32, %c0_i32_0 : i32, i32
  }
  func.func @transform_2(%arg0: i32) -> (i32, i32) {
    %c0_i32 = arith.constant 0 : i32
    %c0_i32_0 = arith.constant 0 : i32
    %c0_i32_1 = arith.constant 0 : i32
    return %c0_i32, %c0_i32_0 : i32, i32
  }
  func.func @transform_3(%arg0: i32) -> (i32, i32) {
    %c0_i32 = arith.constant 0 : i32
    %c0_i32_0 = arith.constant 0 : i32
    %c0_i32_1 = arith.constant 0 : i32
    return %c0_i32, %c0_i32_0 : i32, i32
  }
  func.func @transform_4(%arg0: i32) -> (i32, i32) {
    %c0_i32 = arith.constant 0 : i32
    %c0_i32_0 = arith.constant 0 : i32
    %c0_i32_1 = arith.constant 0 : i32
    return %c0_i32, %c0_i32_0 : i32, i32
  }
  func.func @transform_5(%arg0: i32) -> (i32, i32) {
    %c0_i32 = arith.constant 0 : i32
    %c0_i32_0 = arith.constant 0 : i32
    %c0_i32_1 = arith.constant 0 : i32
    return %c0_i32, %c0_i32_0 : i32, i32
  }
  func.func @transform_6(%arg0: i32) -> (i32, i32) {
    %c0_i32 = arith.constant 0 : i32
    %c0_i32_0 = arith.constant 0 : i32
    %c0_i32_1 = arith.constant 0 : i32
    return %c0_i32, %c0_i32_0 : i32, i32
  }
  func.func @transform_7(%arg0: i32) -> (i32, i32) {
    %c0_i32 = arith.constant 0 : i32
    %c0_i32_0 = arith.constant 0 : i32
    %c0_i32_1 = arith.constant 0 : i32
    return %c0_i32, %c0_i32_0 : i32, i32
  }
  func.func @transform_8(%arg0: i32) -> (i32, i32, i32) {
    %c0_i32 = arith.constant 0 : i32
    %c0_i32_0 = arith.constant 0 : i32
    %c0_i32_1 = arith.constant 0 : i32
    return %arg0, %c0_i32, %c0_i32_0 : i32, i32, i32
  }
}

</mosaic_0001>

<bundles_post_ra>
// kernel: mlp_forward.1
= control target key start
LH: loop header
LB: loop body
LE: loop exit
PB: predicated region body
PF: predicated region fallthrough
CT: control target
= control target key end

     0   :  { %s1573_s0 = inlined_call_operand.vmem [shape: f32[256,48], index: 0, kind: input, shape index: {}]   ;;  %s1574_s1 = inlined_call_operand.vmem [shape: f32[48,24], index: 1, kind: input, shape index: {}]   ;;  %s1575_s2 = inlined_call_operand.vmem [shape: f32[1,24], index: 2, kind: input, shape index: {}]   ;;  %s1576_s3 = inlined_call_operand.vmem [shape: f32[24,12], index: 3, kind: input, shape index: {}]   ;;  %s1577_s4 = inlined_call_operand.vmem [shape: f32[1,12], index: 4, kind: input, shape index: {}]   ;;  %s1578_s5 = inlined_call_operand.vmem [shape: f32[12,8], index: 5, kind: input, shape index: {}]   ;;  %s1579_s6 = inlined_call_operand.vmem [shape: f32[1,8], index: 6, kind: input, shape index: {}]   ;;  %s1580_s7 = inlined_call_operand.vmem [shape: f32[8,1], index: 7, kind: input, shape index: {}]   ;;  %s1581_s8 = inlined_call_operand.hbm [shape: f32[1,1,256], index: 8, kind: output, shape index: {}]  }
   0x1   :  { %v67_v0 = vld [vmem:[%s1574_s1 + $0x28] sm:$0xff]  ;;  %v66_v1 = vld [vmem:[%s1574_s1 + $0x20] sm:$0xff]  ;;  %v65_v2 = vld [vmem:[%s1574_s1 + $0x18] sm:$0xff] }
   0x2   :  { %179 = vmatpush.msra.mxu0 %v67_v0  ;;  %1129 = vmatpush.msra.mxu3 %v67_v0  ;;  %v64_v3 = vld [vmem:[%s1574_s1 + $0x10] sm:$0xff] }
   0x4   :  { %180 = vmatpush.msra.mxu0 %v66_v1  ;;  %1130 = vmatpush.msra.mxu3 %v66_v1 }
   0x5   :  { %13 = vsyncpa [#allocation3], 0  ;;  %v63_v4 = vld [vmem:[%s1574_s1 + $0x8] sm:$0xff]  ;;  %v62_v5 = vld [vmem:[%s1574_s1] sm:$0xff]  ;;  %vm72_vm0 = vcmask 392192   ;;  %vm353_vm1 = vcmask 195584  }
   0x6   :  { %181 = vmatpush.msra.mxu0 %v65_v2  ;;  %1131 = vmatpush.msra.mxu3 %v65_v2  ;;  %v30_v6 = vld [vmem:[%s1573_s0] sm:$0xff]  ;;  %v31_v7 = vld [vmem:[%s1573_s0 + $0x8] sm:$0xff]  ;;  %v32_v8 = vld [vmem:[%s1573_s0 + $0x10] sm:$0xff]  ;;  %vm730_vm2 = vcmask 1043456   ;;  %vm633_vm3 = vcmask 97280   ;;  %s1023_s24 = sshll.u32 %s1581_s8, 4  ;;  %s1024_s24 = int_to_ptr.hbm [resolvable:$true] %s1023_s24 }
   0x7   :  { %v33_v9 = vld [vmem:[%s1573_s0 + $0x18] sm:$0xff]  ;;  %v34_v10 = vld [vmem:[%s1573_s0 + $0x20] sm:$0xff]  ;;  %v35_v11 = vld [vmem:[%s1573_s0 + $0x28] sm:$0xff]  ;;  %vm1008_vm4 = vcmask 1040384  }
   0x8   :  { %182 = vmatpush.msra.mxu0 %v64_v3  ;;  %1132 = vmatpush.msra.mxu3 %v64_v3  ;;  %v36_v12 = vld [vmem:[%s1573_s0 + $0x30] sm:$0xff]  ;;  %v37_v13 = vld [vmem:[%s1573_s0 + $0x38] sm:$0xff]  ;;  %v38_v14 = vld [vmem:[%s1573_s0 + $0x40] sm:$0xff] }
   0x9   :  { %v39_v15 = vld [vmem:[%s1573_s0 + $0x48] sm:$0xff]  ;;  %v40_v16 = vld [vmem:[%s1573_s0 + $0x50] sm:$0xff]  ;;  %v41_v17 = vld [vmem:[%s1573_s0 + $0x58] sm:$0xff] }
   0xa   :  { %183 = vmatpush.msra.mxu0 %v63_v4  ;;  %1133 = vmatpush.msra.mxu3 %v63_v4  ;;  %v42_v18 = vld [vmem:[%s1573_s0 + $0x60] sm:$0xff]  ;;  %v348_v19 = vld [vmem:[%s1576_s3 + $0x10] sm:$0xff]  ;;  %v347_v20 = vld [vmem:[%s1576_s3 + $0x8] sm:$0xff] }
   0xb   :  { %463 = vmatpush.msra.mxu1 %v348_v19  ;;  %v346_v21 = vld [vmem:[%s1576_s3] sm:$0xff]  ;;  %v43_v22 = vld [vmem:[%s1573_s0 + $0x68] sm:$0xff]  ;;  %v44_v23 = vld [vmem:[%s1573_s0 + $0x70] sm:$0xff] }
   0xc   :  { %184 = vmatpush.msra.mxu0 %v62_v5  ;;  %1134 = vmatpush.msra.mxu3 %v62_v5  ;;  %v45_v24 = vld [vmem:[%s1573_s0 + $0x78] sm:$0xff]  ;;  %v1322_v25 = vld [vmem:[%s1575_s2] ss:$0 sm:$0xff]  ;;  %v47_v32 = vld [vmem:[%s1573_s0 + $0x88] sm:$0xff] }
   0xd   :  { %1032 = vmatmul.msk.f32.vlgmr.msra.gmra.mxu0 %vm72_vm0, %v30_v6  ;;  %464 = vmatpush.msra.mxu1 %v347_v20  ;;  %v46_v27 = vld [vmem:[%s1573_s0 + $0x80] sm:$0xff]  ;;  %v48_v37 = vld [vmem:[%s1573_s0 + $0x90] sm:$0xff]  ;;  %v49_v43 = vld [vmem:[%s1573_s0 + $0x98] sm:$0xff] }
   0xe   :  { %1135 = vmatpush.msrb.mxu3 %v348_v19  ;;  %v54_v38 = vld [vmem:[%s1573_s0 + $0xc0] sm:$0xff]  ;;  %v55_v44 = vld [vmem:[%s1573_s0 + $0xc8] sm:$0xff]  ;;  %v56_v50 = vld [vmem:[%s1573_s0 + $0xd0] sm:$0xff] }
   0xf   :  { %465 = vmatpush.msra.mxu1 %v346_v21  ;;  %1056 = vmatmul.msk.f32.vlgmr.msra.gmra.mxu3 %vm72_vm0, %v54_v38  ;;  %v50_v49 = vld [vmem:[%s1573_s0 + $0xa0] sm:$0xff]  ;;  %v51_v55 = vld [vmem:[%s1573_s0 + $0xa8] sm:$0xff]  ;;  %v57_v56 = vld [vmem:[%s1573_s0 + $0xd8] sm:$0xff] }
  0x10   :  { %1136 = vmatpush.msrb.mxu3 %v347_v20  ;;  %v52_v61 = vld [vmem:[%s1573_s0 + $0xb0] sm:$0xff]  ;;  %v58_v62 = vld [vmem:[%s1573_s0 + $0xe0] sm:$0xff]  ;;  %v53_v3 = vld [vmem:[%s1573_s0 + $0xb8] sm:$0xff] }
  0x11   :  { %v59_v4 = vld [vmem:[%s1573_s0 + $0xe8] sm:$0xff] }
  0x12   :  { %1137 = vmatpush.msrb.mxu3 %v346_v21 }
  0x15   :  { %1033 = vmatmul.msk.f32.gmra.mxu0 %vm72_vm0, %v31_v7 }
  0x17   :  { %1057 = vmatmul.msk.f32.gmra.mxu3 %vm72_vm0, %v55_v44 }
  0x1d   :  { %1034 = vmatmul.msk.f32.gmra.mxu0 %vm72_vm0, %v32_v8 }
  0x1f   :  { %1058 = vmatmul.msk.f32.gmra.mxu3 %vm72_vm0, %v56_v50 }
  0x25   :  { %1035 = vmatmul.msk.f32.gmra.mxu0 %vm72_vm0, %v33_v9  ;;  %v60_v9 = vld [vmem:[%s1573_s0 + $0xf0] sm:$0xff] }
  0x27   :  { %1059 = vmatmul.msk.f32.gmra.mxu3 %vm72_vm0, %v57_v56 }
  0x2d   :  { %1036 = vmatmul.msk.f32.gmra.mxu0 %vm72_vm0, %v34_v10 }
  0x2f   :  { %1060 = vmatmul.msk.f32.gmra.mxu3 %vm72_vm0, %v58_v62 }
  0x35   :  { %1037 = vmatmul.msk.f32.gmra.mxu0 %vm72_vm0, %v35_v11 }
  0x37   :  { %1061 = vmatmul.msk.f32.gmra.mxu3 %vm72_vm0, %v59_v4 }
  0x3d   :  { %1038 = vmatmul.msk.f32.gmra.mxu0 %vm72_vm0, %v36_v12 }
  0x3f   :  { %1062 = vmatmul.msk.f32.gmra.mxu3 %vm72_vm0, %v60_v9 }
  0x45   :  { %1039 = vmatmul.msk.f32.gmra.mxu0 %vm72_vm0, %v37_v13 }
  0x4d   :  { %1040 = vmatmul.msk.f32.gmra.mxu0 %vm72_vm0, %v38_v14  ;;  %v61_v14 = vld [vmem:[%s1573_s0 + $0xf8] sm:$0xff] }
  0x4e   :  { %1063 = vmatmul.msk.f32.gmra.mxu3 %vm72_vm0, %v61_v14 }
  0x55   :  { %1041 = vmatmul.msk.f32.gmra.mxu0 %vm72_vm0, %v39_v15 }
  0x5d   :  { %1042 = vmatmul.msk.f32.gmra.mxu0 %vm72_vm0, %v40_v16 }
  0x65   :  { %1043 = vmatmul.msk.f32.gmra.mxu0 %vm72_vm0, %v41_v17 }
  0x6d   :  { %1044 = vmatmul.msk.f32.gmra.mxu0 %vm72_vm0, %v42_v18 }
  0x75   :  { %1045 = vmatmul.msk.f32.gmra.mxu0 %vm72_vm0, %v43_v22 }
  0x7d   :  { %1046 = vmatmul.msk.f32.gmra.mxu0 %vm72_vm0, %v44_v23 }
  0x85   :  { %1047 = vmatmul.msk.f32.gmra.mxu0 %vm72_vm0, %v45_v24 }
  0x8a   :  { %v186_v26 = vpop.f32.mrf.mxu0 }
  0x8b   :  { %v187_v28 = vadd.f32 %v1322_v25, %v186_v26 }
  0x8d   :  { %v282_v29 = vmul.f32 0.01, %v187_v28  ;;  %1048 = vmatmul.msk.f32.gmra.mxu0 %vm72_vm0, %v46_v27 }
  0x8f   :  { %v314_v30 = vmax.f32 %v187_v28, %v282_v29 }
  0x91   :  { %1064 = vmatmul.msk.f32.vlgmr.msra.gmra.mxu1 %vm353_vm1, %v314_v30 }
  0x92   :  { %v189_v31 = vpop.f32.mrf.mxu0 }
  0x93   :  { %v190_v33 = vadd.f32 %v1322_v25, %v189_v31  ;;  %v628_v31 = vld [vmem:[%s1578_s5 + $0x8] sm:$0xf] }
  0x94   :  { %1096 = vmatpush.msk.msra.mxu2 %vm730_vm2, %v628_v31  ;;  %1138 = vmatpush.msk.msra.mxu3 %vm730_vm2, %v628_v31 }
  0x95   :  { %v283_v34 = vmul.f32 0.01, %v190_v33  ;;  %1049 = vmatmul.msk.f32.gmra.mxu0 %vm72_vm0, %v47_v32 }
  0x97   :  { %v315_v35 = vmax.f32 %v190_v33, %v283_v34  ;;  %v627_v34 = vld [vmem:[%s1578_s5] sm:$0xff] }
  0x98   :  { %749 = vmatpush.msra.mxu2 %v627_v34  ;;  %1139 = vmatpush.msra.mxu3 %v627_v34 }
  0x99   :  { %1065 = vmatmul.msk.f32.gmra.mxu1 %vm353_vm1, %v315_v35 }
  0x9a   :  { %v192_v36 = vpop.f32.mrf.mxu0 }
  0x9b   :  { %v193_v39 = vadd.f32 %v1322_v25, %v192_v36 }
  0x9d   :  { %v284_v40 = vmul.f32 0.01, %v193_v39  ;;  %1050 = vmatmul.msk.f32.gmra.mxu0 %vm72_vm0, %v48_v37 }
  0x9f   :  { %v316_v41 = vmax.f32 %v193_v39, %v284_v40 }
  0xa1   :  { %1066 = vmatmul.msk.f32.gmra.mxu1 %vm353_vm1, %v316_v41 }
  0xa2   :  { %v195_v42 = vpop.f32.mrf.mxu0 }
  0xa3   :  { %v196_v45 = vadd.f32 %v1322_v25, %v195_v42 }
  0xa5   :  { %v285_v46 = vmul.f32 0.01, %v196_v45  ;;  %1051 = vmatmul.msk.f32.gmra.mxu0 %vm72_vm0, %v49_v43 }
  0xa7   :  { %v317_v47 = vmax.f32 %v196_v45, %v285_v46 }
  0xa9   :  { %1067 = vmatmul.msk.f32.gmra.mxu1 %vm353_vm1, %v317_v47  ;;  %v1430_v47 = vld [vmem:[%s1577_s4] ss:$0 sm:$0xff] }
  0xaa   :  { %v198_v48 = vpop.f32.mrf.mxu0 }
  0xab   :  { %v199_v51 = vadd.f32 %v1322_v25, %v198_v48 }
  0xad   :  { %v286_v52 = vmul.f32 0.01, %v199_v51  ;;  %1052 = vmatmul.msk.f32.gmra.mxu0 %vm72_vm0, %v50_v49 }
  0xaf   :  { %v318_v53 = vmax.f32 %v199_v51, %v286_v52 }
  0xb1   :  { %1068 = vmatmul.msk.f32.gmra.mxu1 %vm353_vm1, %v318_v53 }
  0xb2   :  { %v201_v54 = vpop.f32.mrf.mxu0 }
  0xb3   :  { %v202_v57 = vadd.f32 %v1322_v25, %v201_v54 }
  0xb5   :  { %v287_v58 = vmul.f32 0.01, %v202_v57  ;;  %1053 = vmatmul.msk.f32.gmra.mxu0 %vm72_vm0, %v51_v55 }
  0xb7   :  { %v319_v59 = vmax.f32 %v202_v57, %v287_v58 }
  0xb9   :  { %1069 = vmatmul.msk.f32.gmra.mxu1 %vm353_vm1, %v319_v59 }
  0xba   :  { %v204_v60 = vpop.f32.mrf.mxu0 }
  0xbb   :  { %v205_v63 = vadd.f32 %v1322_v25, %v204_v60 }
  0xbd   :  { %v288_v0 = vmul.f32 0.01, %v205_v63  ;;  %1054 = vmatmul.msk.f32.gmra.mxu0 %vm72_vm0, %v52_v61 }
  0xbf   :  { %v320_v1 = vmax.f32 %v205_v63, %v288_v0 }
  0xc1   :  { %1070 = vmatmul.msk.f32.gmra.mxu1 %vm353_vm1, %v320_v1 }
  0xc2   :  { %v207_v2 = vpop.f32.mrf.mxu0 }
  0xc3   :  { %v208_v5 = vadd.f32 %v1322_v25, %v207_v2  ;;  %v1440_v2 = vpop.f32.mrf.mxu3 }
  0xc5   :  { %v289_v6 = vmul.f32 0.01, %v208_v5  ;;  %1055 = vmatmul.msk.f32.gmra.mxu0 %vm72_vm0, %v53_v3 }
  0xc7   :  { %v321_v7 = vmax.f32 %v208_v5, %v289_v6 }
  0xc9   :  { %1071 = vmatmul.msk.f32.gmra.mxu1 %vm353_vm1, %v321_v7 }
  0xca   :  { %v210_v8 = vpop.f32.mrf.mxu0 }
  0xcb   :  { %v211_v10 = vadd.f32 %v1322_v25, %v210_v8 }
  0xcd   :  { %v290_v11 = vmul.f32 0.01, %v211_v10 }
  0xcf   :  { %v322_v12 = vmax.f32 %v211_v10, %v290_v11  ;;  %v261_v11 = vpop.f32.mrf.mxu3 }
  0xd0   :  { %v262_v14 = vadd.f32 %v1322_v25, %v261_v11 }
  0xd1   :  { %1072 = vmatmul.msk.f32.gmra.mxu1 %vm353_vm1, %v322_v12 }
  0xd2   :  { %v213_v13 = vpop.f32.mrf.mxu0 }
  0xd3   :  { %v214_v15 = vadd.f32 %v1322_v25, %v213_v13 }
  0xd5   :  { %v291_v16 = vmul.f32 0.01, %v214_v15 }
  0xd7   :  { %v323_v17 = vmax.f32 %v214_v15, %v291_v16  ;;  %v307_v16 = vmul.f32 0.01, %v262_v14 }
  0xd9   :  { %1073 = vmatmul.msk.f32.gmra.mxu1 %vm353_vm1, %v323_v17 }
  0xda   :  { %v216_v18 = vpop.f32.mrf.mxu0 }
  0xdb   :  { %v217_v19 = vadd.f32 %v1322_v25, %v216_v18 }
  0xdd   :  { %v292_v20 = vmul.f32 0.01, %v217_v19 }
  0xdf   :  { %v324_v21 = vmax.f32 %v217_v19, %v292_v20  ;;  %v339_v20 = vmax.f32 %v262_v14, %v307_v16 }
  0xe1   :  { %1074 = vmatmul.msk.f32.gmra.mxu1 %vm353_vm1, %v324_v21  ;;  %1089 = vmatmul.msk.f32.vlgmr.msrb.gmra.mxu3 %vm353_vm1, %v339_v20 }
  0xe2   :  { %v219_v22 = vpop.f32.mrf.mxu0 }
  0xe3   :  { %v220_v23 = vadd.f32 %v1322_v25, %v219_v22 }
  0xe5   :  { %v293_v24 = vmul.f32 0.01, %v220_v23 }
  0xe7   :  { %v325_v26 = vmax.f32 %v220_v23, %v293_v24  ;;  %v264_v23 = vpop.f32.mrf.mxu3 }
  0xe9   :  { %1075 = vmatmul.msk.f32.gmra.mxu1 %vm353_vm1, %v325_v26 }
  0xea   :  { %v222_v27 = vpop.f32.mrf.mxu0 }
  0xeb   :  { %v223_v28 = vadd.f32 %v1322_v25, %v222_v27  ;;  %v265_v27 = vadd.f32 %v1322_v25, %v264_v23 }
  0xed   :  { %v294_v29 = vmul.f32 0.01, %v223_v28 }
  0xef   :  { %v326_v30 = vmax.f32 %v223_v28, %v294_v29  ;;  %v308_v29 = vmul.f32 0.01, %v265_v27 }
  0xf1   :  { %1076 = vmatmul.msk.f32.gmra.mxu1 %vm353_vm1, %v326_v30 }
  0xf2   :  { %v225_v32 = vpop.f32.mrf.mxu0 }
  0xf3   :  { %v226_v33 = vadd.f32 %v1322_v25, %v225_v32 }
  0xf5   :  { %v295_v35 = vmul.f32 0.01, %v226_v33 }
  0xf7   :  { %v327_v36 = vmax.f32 %v226_v33, %v295_v35  ;;  %v340_v33 = vmax.f32 %v265_v27, %v308_v29 }
  0xf9   :  { %1077 = vmatmul.msk.f32.gmra.mxu1 %vm353_vm1, %v327_v36  ;;  %1090 = vmatmul.msk.f32.gmra.mxu3 %vm353_vm1, %v340_v33  ;;  %v267_v36 = vpop.f32.mrf.mxu3 }
  0xfa   :  { %v228_v37 = vpop.f32.mrf.mxu0 }
  0xfb   :  { %v229_v38 = vadd.f32 %v1322_v25, %v228_v37 }
  0xfd   :  { %v296_v39 = vmul.f32 0.01, %v229_v38 }
  0xff   :  { %v328_v40 = vmax.f32 %v229_v38, %v296_v39  ;;  %v268_v39 = vadd.f32 %v1322_v25, %v267_v36 }
 0x101   :  { %1078 = vmatmul.msk.f32.gmra.mxu1 %vm353_vm1, %v328_v40 }
 0x102   :  { %v231_v41 = vpop.f32.mrf.mxu0 }
 0x103   :  { %v232_v42 = vadd.f32 %v1322_v25, %v231_v41  ;;  %v309_v41 = vmul.f32 0.01, %v268_v39 }
 0x105   :  { %v297_v43 = vmul.f32 0.01, %v232_v42 }
 0x107   :  { %v329_v44 = vmax.f32 %v232_v42, %v297_v43 }
 0x109   :  { %1079 = vmatmul.msk.f32.gmra.mxu1 %vm353_vm1, %v329_v44 }
 0x10a   :  { %v234_v45 = vpop.f32.mrf.mxu0 }
 0x10b   :  { %v235_v46 = vadd.f32 %v1322_v25, %v234_v45  ;;  %v341_v45 = vmax.f32 %v268_v39, %v309_v41 }
 0x10d   :  { %v298_v48 = vmul.f32 0.01, %v235_v46  ;;  %1091 = vmatmul.msk.f32.gmra.mxu3 %vm353_vm1, %v341_v45 }
 0x10e   :  { %v467_v49 = vpop.f32.mrf.mxu1 }
 0x10f   :  { %v330_v50 = vmax.f32 %v235_v46, %v298_v48  ;;  %v468_v51 = vadd.f32 %v1430_v47, %v467_v49  ;;  %v270_v49 = vpop.f32.mrf.mxu3 }
 0x111   :  { %v563_v52 = vmul.f32 0.01, %v468_v51  ;;  %1080 = vmatmul.msk.f32.gmra.mxu1 %vm353_vm1, %v330_v50 }
 0x112   :  { %v237_v53 = vpop.f32.mrf.mxu0 }
 0x113   :  { %v595_v54 = vmax.f32 %v468_v51, %v563_v52  ;;  %v238_v55 = vadd.f32 %v1322_v25, %v237_v53  ;;  %v271_v52 = vadd.f32 %v1322_v25, %v270_v49 }
 0x115   :  { %v299_v56 = vmul.f32 0.01, %v238_v55  ;;  %1097 = vmatmul.msk.f32.vlgmr.msra.gmra.mxu2 %vm633_vm3, %v595_v54  ;;  %v310_v54 = vmul.f32 0.01, %v271_v52 }
 0x116   :  { %v470_v57 = vpop.f32.mrf.mxu1 }
 0x117   :  { %v331_v58 = vmax.f32 %v238_v55, %v299_v56  ;;  %v471_v59 = vadd.f32 %v1430_v47, %v470_v57 }
 0x119   :  { %v564_v60 = vmul.f32 0.01, %v471_v59  ;;  %1081 = vmatmul.msk.f32.gmra.mxu1 %vm353_vm1, %v331_v58  ;;  %v342_v58 = vmax.f32 %v271_v52, %v310_v54 }
 0x11a   :  { %v240_v61 = vpop.f32.mrf.mxu0 }
 0x11b   :  { %v596_v62 = vmax.f32 %v471_v59, %v564_v60  ;;  %v241_v63 = vadd.f32 %v1322_v25, %v240_v61  ;;  %1092 = vmatmul.msk.f32.gmra.mxu3 %vm353_vm1, %v342_v58  ;;  %v273_v61 = vpop.f32.mrf.mxu3 }
 0x11d   :  { %v300_v0 = vmul.f32 0.01, %v241_v63  ;;  %1098 = vmatmul.msk.f32.gmra.mxu2 %vm633_vm3, %v596_v62  ;;  %v259_v62 = vadd.f32 %v1322_v25, %v1440_v2 }
 0x11e   :  { %v473_v1 = vpop.f32.mrf.mxu1 }
 0x11f   :  { %v332_v3 = vmax.f32 %v241_v63, %v300_v0  ;;  %v474_v4 = vadd.f32 %v1430_v47, %v473_v1  ;;  %v274_v1 = vadd.f32 %v1322_v25, %v273_v61 }
 0x121   :  { %v565_v5 = vmul.f32 0.01, %v474_v4  ;;  %1082 = vmatmul.msk.f32.gmra.mxu1 %vm353_vm1, %v332_v3 }
 0x122   :  { %v243_v6 = vpop.f32.mrf.mxu0 }
 0x123   :  { %v597_v7 = vmax.f32 %v474_v4, %v565_v5  ;;  %v244_v8 = vadd.f32 %v1322_v25, %v243_v6  ;;  %v311_v4 = vmul.f32 0.01, %v274_v1  ;;  %v306_v5 = vmul.f32 0.01, %v259_v62 }
 0x125   :  { %v301_v9 = vmul.f32 0.01, %v244_v8  ;;  %1099 = vmatmul.msk.f32.gmra.mxu2 %vm633_vm3, %v597_v7  ;;  %v343_v7 = vmax.f32 %v274_v1, %v311_v4 }
 0x126   :  { %v476_v10 = vpop.f32.mrf.mxu1 }
 0x127   :  { %v333_v12 = vmax.f32 %v244_v8, %v301_v9  ;;  %v477_v13 = vadd.f32 %v1430_v47, %v476_v10  ;;  %1093 = vmatmul.msk.f32.gmra.mxu3 %vm353_vm1, %v343_v7  ;;  %v276_v9 = vpop.f32.mrf.mxu3  ;;  %v338_v10 = vmax.f32 %v259_v62, %v306_v5 }
 0x128   :  { %v277_v11 = vadd.f32 %v1322_v25, %v276_v9 }
 0x129   :  { %v566_v15 = vmul.f32 0.01, %v477_v13  ;;  %1083 = vmatmul.msk.f32.gmra.mxu1 %vm353_vm1, %v333_v12 }
 0x12a   :  { %v246_v17 = vpop.f32.mrf.mxu0 }
 0x12b   :  { %v598_v18 = vmax.f32 %v477_v13, %v566_v15  ;;  %v247_v19 = vadd.f32 %v1322_v25, %v246_v17  ;;  %v312_v13 = vmul.f32 0.01, %v277_v11 }
 0x12d   :  { %v302_v21 = vmul.f32 0.01, %v247_v19  ;;  %1100 = vmatmul.msk.f32.gmra.mxu2 %vm633_vm3, %v598_v18  ;;  %v344_v15 = vmax.f32 %v277_v11, %v312_v13 }
 0x12e   :  { %v479_v22 = vpop.f32.mrf.mxu1 }
 0x12f   :  { %v334_v24 = vmax.f32 %v247_v19, %v302_v21  ;;  %v480_v26 = vadd.f32 %v1430_v47, %v479_v22  ;;  %1094 = vmatmul.msk.f32.gmra.mxu3 %vm353_vm1, %v344_v15  ;;  %v279_v17 = vpop.f32.mrf.mxu3 }
 0x130   :  { %v280_v19 = vadd.f32 %v1322_v25, %v279_v17 }
 0x131   :  { %v567_v28 = vmul.f32 0.01, %v480_v26  ;;  %1084 = vmatmul.msk.f32.gmra.mxu1 %vm353_vm1, %v334_v24 }
 0x132   :  { %v249_v30 = vpop.f32.mrf.mxu0  ;;  %v313_v21 = vmul.f32 0.01, %v280_v19 }
 0x133   :  { %v599_v31 = vmax.f32 %v480_v26, %v567_v28  ;;  %v250_v32 = vadd.f32 %v1322_v25, %v249_v30 }
 0x134   :  { %v345_v23 = vmax.f32 %v280_v19, %v313_v21 }
 0x135   :  { %v303_v34 = vmul.f32 0.01, %v250_v32  ;;  %1101 = vmatmul.msk.f32.gmra.mxu2 %vm633_vm3, %v599_v31 }
 0x136   :  { %v482_v35 = vpop.f32.mrf.mxu1 }
 0x137   :  { %v335_v37 = vmax.f32 %v250_v32, %v303_v34  ;;  %v483_v38 = vadd.f32 %v1430_v47, %v482_v35  ;;  %1095 = vmatmul.msk.f32.gmra.mxu3 %vm353_vm1, %v345_v23 }
 0x139   :  { %v568_v40 = vmul.f32 0.01, %v483_v38  ;;  %1085 = vmatmul.msk.f32.gmra.mxu1 %vm353_vm1, %v335_v37 }
 0x13a   :  { %v252_v42 = vpop.f32.mrf.mxu0 }
 0x13b   :  { %v600_v43 = vmax.f32 %v483_v38, %v568_v40  ;;  %v253_v44 = vadd.f32 %v1322_v25, %v252_v42 }
 0x13d   :  { %v304_v46 = vmul.f32 0.01, %v253_v44  ;;  %1102 = vmatmul.msk.f32.gmra.mxu2 %vm633_vm3, %v600_v43 }
 0x13e   :  { %v485_v48 = vpop.f32.mrf.mxu1 }
 0x13f   :  { %v336_v50 = vmax.f32 %v253_v44, %v304_v46  ;;  %v486_v51 = vadd.f32 %v1430_v47, %v485_v48 }
 0x141   :  { %v569_v53 = vmul.f32 0.01, %v486_v51  ;;  %1086 = vmatmul.msk.f32.gmra.mxu1 %vm353_vm1, %v336_v50 }
 0x142   :  { %v255_v55 = vpop.f32.mrf.mxu0 }
 0x143   :  { %v601_v56 = vmax.f32 %v486_v51, %v569_v53  ;;  %v256_v57 = vadd.f32 %v1322_v25, %v255_v55  ;;  %v1503_v53 = vld [vmem:[%s1579_s6] ss:$0 sm:$0xff] }
 0x145   :  { %v305_v59 = vmul.f32 0.01, %v256_v57  ;;  %1103 = vmatmul.msk.f32.gmra.mxu2 %vm633_vm3, %v601_v56 }
 0x146   :  { %v488_v60 = vpop.f32.mrf.mxu1 }
 0x147   :  { %v337_v63 = vmax.f32 %v256_v57, %v305_v59  ;;  %v489_v0 = vadd.f32 %v1430_v47, %v488_v60 }
 0x149   :  { %v570_v3 = vmul.f32 0.01, %v489_v0  ;;  %1087 = vmatmul.msk.f32.gmra.mxu1 %vm353_vm1, %v337_v63 }
 0x14b   :  { %v602_v6 = vmax.f32 %v489_v0, %v570_v3 }
 0x14d   :  { %1104 = vmatmul.msk.f32.gmra.mxu2 %vm633_vm3, %v602_v6 }
 0x14e   :  { %v491_v8 = vpop.f32.mrf.mxu1 }
 0x14f   :  { %v492_v2 = vadd.f32 %v1430_v47, %v491_v8 }
 0x151   :  { %v571_v12 = vmul.f32 0.01, %v492_v2  ;;  %1088 = vmatmul.msk.f32.gmra.mxu1 %vm353_vm1, %v338_v10 }
 0x153   :  { %v603_v14 = vmax.f32 %v492_v2, %v571_v12 }
 0x155   :  { %1105 = vmatmul.msk.f32.gmra.mxu2 %vm633_vm3, %v603_v14 }
 0x156   :  { %v494_v16 = vpop.f32.mrf.mxu1 }
 0x157   :  { %v495_v18 = vadd.f32 %v1430_v47, %v494_v16 }
 0x159   :  { %v572_v20 = vmul.f32 0.01, %v495_v18 }
 0x15b   :  { %v604_v22 = vmax.f32 %v495_v18, %v572_v20 }
 0x15d   :  { %1106 = vmatmul.msk.f32.gmra.mxu2 %vm633_vm3, %v604_v22 }
 0x15e   :  { %v497_v24 = vpop.f32.mrf.mxu1 }
 0x15f   :  { %v498_v26 = vadd.f32 %v1430_v47, %v497_v24 }
 0x161   :  { %v573_v27 = vmul.f32 0.01, %v498_v26 }
 0x163   :  { %v605_v28 = vmax.f32 %v498_v26, %v573_v27 }
 0x164   :  { %v542_v17 = vpop.f32.mrf.mxu3 }
 0x165   :  { %1107 = vmatmul.msk.f32.gmra.mxu2 %vm633_vm3, %v605_v28  ;;  %v543_v20 = vadd.f32 %v1430_v47, %v542_v17 }
 0x166   :  { %v500_v29 = vpop.f32.mrf.mxu1 }
 0x167   :  { %v501_v30 = vadd.f32 %v1430_v47, %v500_v29  ;;  %v588_v23 = vmul.f32 0.01, %v543_v20 }
 0x169   :  { %v574_v31 = vmul.f32 0.01, %v501_v30  ;;  %v620_v26 = vmax.f32 %v543_v20, %v588_v23 }
 0x16b   :  { %v606_v25 = vmax.f32 %v501_v30, %v574_v31  ;;  %1122 = vmatmul.msk.f32.vlgmr.msra.gmra.mxu3 %vm633_vm3, %v620_v26 }
 0x16d   :  { %1108 = vmatmul.msk.f32.gmra.mxu2 %vm633_vm3, %v606_v25 }
 0x16e   :  { %v503_v32 = vpop.f32.mrf.mxu1 }
 0x16f   :  { %v504_v33 = vadd.f32 %v1430_v47, %v503_v32 }
 0x171   :  { %v575_v34 = vmul.f32 0.01, %v504_v33 }
 0x173   :  { %v607_v35 = vmax.f32 %v504_v33, %v575_v34 }
 0x175   :  { %1109 = vmatmul.msk.f32.gmra.mxu2 %vm633_vm3, %v607_v35 }
 0x176   :  { %v506_v36 = vpop.f32.mrf.mxu1 }
 0x177   :  { %v507_v37 = vadd.f32 %v1430_v47, %v506_v36 }
 0x179   :  { %v576_v38 = vmul.f32 0.01, %v507_v37 }
 0x17b   :  { %v608_v39 = vmax.f32 %v507_v37, %v576_v38 }
 0x17c   :  { %v545_v30 = vpop.f32.mrf.mxu3 }
 0x17d   :  { %1110 = vmatmul.msk.f32.gmra.mxu2 %vm633_vm3, %v608_v39  ;;  %v546_v32 = vadd.f32 %v1430_v47, %v545_v30 }
 0x17e   :  { %v509_v40 = vpop.f32.mrf.mxu1 }
 0x17f   :  { %v510_v41 = vadd.f32 %v1430_v47, %v509_v40  ;;  %v589_v35 = vmul.f32 0.01, %v546_v32 }
 0x181   :  { %v577_v42 = vmul.f32 0.01, %v510_v41  ;;  %v621_v37 = vmax.f32 %v546_v32, %v589_v35 }
 0x183   :  { %v609_v43 = vmax.f32 %v510_v41, %v577_v42  ;;  %1123 = vmatmul.msk.f32.gmra.mxu3 %vm633_vm3, %v621_v37 }
 0x185   :  { %1111 = vmatmul.msk.f32.gmra.mxu2 %vm633_vm3, %v609_v43 }
 0x186   :  { %v512_v44 = vpop.f32.mrf.mxu1 }
 0x187   :  { %v513_v45 = vadd.f32 %v1430_v47, %v512_v44 }
 0x189   :  { %v578_v46 = vmul.f32 0.01, %v513_v45 }
 0x18b   :  { %v610_v48 = vmax.f32 %v513_v45, %v578_v46 }
 0x18d   :  { %1112 = vmatmul.msk.f32.gmra.mxu2 %vm633_vm3, %v610_v48 }
 0x18e   :  { %v515_v49 = vpop.f32.mrf.mxu1 }
 0x18f   :  { %v516_v50 = vadd.f32 %v1430_v47, %v515_v49 }
 0x190   :  { %v548_v41 = vpop.f32.mrf.mxu3 }
 0x191   :  { %v579_v51 = vmul.f32 0.01, %v516_v50  ;;  %v549_v44 = vadd.f32 %v1430_v47, %v548_v41 }
 0x193   :  { %v611_v52 = vmax.f32 %v516_v50, %v579_v51  ;;  %v590_v48 = vmul.f32 0.01, %v549_v44 }
 0x195   :  { %1113 = vmatmul.msk.f32.gmra.mxu2 %vm633_vm3, %v611_v52  ;;  %v622_v50 = vmax.f32 %v549_v44, %v590_v48 }
 0x196   :  { %v518_v54 = vpop.f32.mrf.mxu1 }
 0x197   :  { %v519_v55 = vadd.f32 %v1430_v47, %v518_v54  ;;  %1124 = vmatmul.msk.f32.gmra.mxu3 %vm633_vm3, %v622_v50 }
 0x198   :  { %v751_v56 = vpop.f32.mrf.mxu2 }
 0x199   :  { %v580_v57 = vmul.f32 0.01, %v519_v55  ;;  %v752_v58 = vadd.f32 %v1503_v53, %v751_v56 }
 0x19b   :  { %v612_v59 = vmax.f32 %v519_v55, %v580_v57  ;;  %v847_v60 = vmul.f32 0.01, %v752_v58 }
 0x19d   :  { %1114 = vmatmul.msk.f32.gmra.mxu2 %vm633_vm3, %v612_v59  ;;  %v879_v61 = vmax.f32 %v752_v58, %v847_v60 }
 0x19e   :  { %v521_v62 = vpop.f32.mrf.mxu1  ;;  %v551_v55 = vpop.f32.mrf.mxu3 }
 0x19f   :  { %v522_v63 = vadd.f32 %v1430_v47, %v521_v62  ;;  %911 = vxpose.xlu0.b32.start [1/16] (narrow) %v879_v61, 8  ;;  %v552_v58 = vadd.f32 %v1430_v47, %v551_v55 }
 0x1a0   :  { %v754_v0 = vpop.f32.mrf.mxu2 }
 0x1a1   :  { %v581_v1 = vmul.f32 0.01, %v522_v63  ;;  %v755_v3 = vadd.f32 %v1503_v53, %v754_v0  ;;  %v591_v61 = vmul.f32 0.01, %v552_v58 }
 0x1a3   :  { %v613_v4 = vmax.f32 %v522_v63, %v581_v1  ;;  %v848_v5 = vmul.f32 0.01, %v755_v3  ;;  %v623_v63 = vmax.f32 %v552_v58, %v591_v61 }
 0x1a5   :  { %1115 = vmatmul.msk.f32.gmra.mxu2 %vm633_vm3, %v613_v4  ;;  %v880_v6 = vmax.f32 %v755_v3, %v848_v5  ;;  %1125 = vmatmul.msk.f32.gmra.mxu3 %vm633_vm3, %v623_v63 }
 0x1a6   :  { %v524_v7 = vpop.f32.mrf.mxu1 }
 0x1a7   :  { %v525_v8 = vadd.f32 %v1430_v47, %v524_v7  ;;  %912 = vxpose.xlu0.b32.cont [2/16] (narrow) %v880_v6, 8 }
 0x1a8   :  { %v757_v9 = vpop.f32.mrf.mxu2 }
 0x1a9   :  { %v582_v10 = vmul.f32 0.01, %v525_v8  ;;  %v758_v2 = vadd.f32 %v1503_v53, %v757_v9 }
 0x1aa   :  { %v554_v4 = vpop.f32.mrf.mxu3 }
 0x1ab   :  { %v614_v11 = vmax.f32 %v525_v8, %v582_v10  ;;  %v849_v12 = vmul.f32 0.01, %v758_v2  ;;  %v555_v7 = vadd.f32 %v1430_v47, %v554_v4 }
 0x1ad   :  { %1116 = vmatmul.msk.f32.gmra.mxu2 %vm633_vm3, %v614_v11  ;;  %v881_v13 = vmax.f32 %v758_v2, %v849_v12  ;;  %v592_v10 = vmul.f32 0.01, %v555_v7 }
 0x1ae   :  { %v527_v14 = vpop.f32.mrf.mxu1 }
 0x1af   :  { %v528_v15 = vadd.f32 %v1430_v47, %v527_v14  ;;  %913 = vxpose.xlu0.b32.cont [3/16] (narrow) %v881_v13, 8  ;;  %v624_v11 = vmax.f32 %v555_v7, %v592_v10  ;;  %v975_v10 = vld [vmem:[%s1580_s7] sm:$0xff]  ;;  %s1182_s7 = smov [#allocation2]  }
 0x1b0   :  { %v760_v16 = vpop.f32.mrf.mxu2  ;;  %s1021_s22 = sshll.u32 %s1182_s7, 4  ;;  %s1022_s22 = int_to_ptr.vmem [resolvable:$true] %s1021_s22 }
 0x1b1   :  { %v583_v18 = vmul.f32 0.01, %v528_v15  ;;  %v761_v19 = vadd.f32 %v1503_v53, %v760_v16  ;;  %1126 = vmatmul.msk.f32.gmra.mxu3 %vm633_vm3, %v624_v11  ;;  %v1181_v11 = vmov 0  }
 0x1b2   :  { %v557_v13 = vpop.f32.mrf.mxu3  ;;  %1142 = vset.pattern.permute.xlu2 %v1181_v11 }
 0x1b3   :  { %v615_v21 = vmax.f32 %v528_v15, %v583_v18  ;;  %v850_v22 = vmul.f32 0.01, %v761_v19  ;;  %v558_v15 = vadd.f32 %v1430_v47, %v557_v13  ;;  %978 = vperm.xlu2 %1142, %v975_v10  }
 0x1b5   :  { %1117 = vmatmul.msk.f32.gmra.mxu2 %vm633_vm3, %v615_v21  ;;  %v882_v24 = vmax.f32 %v761_v19, %v850_v22  ;;  %v593_v17 = vmul.f32 0.01, %v558_v15 }
 0x1b6   :  { %v530_v27 = vpop.f32.mrf.mxu1 }
 0x1b7   :  { %v531_v28 = vadd.f32 %v1430_v47, %v530_v27  ;;  %914 = vxpose.xlu0.b32.cont [4/16] (narrow) %v882_v24, 8  ;;  %v625_v19 = vmax.f32 %v558_v15, %v593_v17 }
 0x1b8   :  { %v763_v29 = vpop.f32.mrf.mxu2 }
 0x1b9   :  { %v584_v31 = vmul.f32 0.01, %v531_v28  ;;  %v764_v25 = vadd.f32 %v1503_v53, %v763_v29  ;;  %1127 = vmatmul.msk.f32.gmra.mxu3 %vm633_vm3, %v625_v19 }
 0x1ba   :  { %v560_v21 = vpop.f32.mrf.mxu3 }
 0x1bb   :  { %v616_v33 = vmax.f32 %v531_v28, %v584_v31  ;;  %v851_v34 = vmul.f32 0.01, %v764_v25  ;;  %v561_v23 = vadd.f32 %v1430_v47, %v560_v21 }
 0x1bd   :  { %1118 = vmatmul.msk.f32.gmra.mxu2 %vm633_vm3, %v616_v33  ;;  %v883_v36 = vmax.f32 %v764_v25, %v851_v34  ;;  %v594_v26 = vmul.f32 0.01, %v561_v23 }
 0x1be   :  { %v533_v38 = vpop.f32.mrf.mxu1 }
 0x1bf   :  { %v534_v39 = vadd.f32 %v1430_v47, %v533_v38  ;;  %915 = vxpose.xlu0.b32.cont [5/16] (narrow) %v883_v36, 8  ;;  %v626_v28 = vmax.f32 %v561_v23, %v594_v26 }
 0x1c0   :  { %v766_v40 = vpop.f32.mrf.mxu2 }
 0x1c1   :  { %v585_v42 = vmul.f32 0.01, %v534_v39  ;;  %v767_v43 = vadd.f32 %v1503_v53, %v766_v40  ;;  %1128 = vmatmul.msk.f32.gmra.mxu3 %vm633_vm3, %v626_v28 }
 0x1c3   :  { %v617_v45 = vmax.f32 %v534_v39, %v585_v42  ;;  %v852_v46 = vmul.f32 0.01, %v767_v43 }
 0x1c5   :  { %1119 = vmatmul.msk.f32.gmra.mxu2 %vm633_vm3, %v617_v45  ;;  %v884_v49 = vmax.f32 %v767_v43, %v852_v46 }
 0x1c6   :  { %v536_v51 = vpop.f32.mrf.mxu1 }
 0x1c7   :  { %v537_v52 = vadd.f32 %v1430_v47, %v536_v51  ;;  %916 = vxpose.xlu0.b32.cont [6/16] (narrow) %v884_v49, 8 }
 0x1c8   :  { %v769_v54 = vpop.f32.mrf.mxu2 }
 0x1c9   :  { %v586_v56 = vmul.f32 0.01, %v537_v52  ;;  %v770_v57 = vadd.f32 %v1503_v53, %v769_v54 }
 0x1cb   :  { %v618_v59 = vmax.f32 %v537_v52, %v586_v56  ;;  %v853_v60 = vmul.f32 0.01, %v770_v57 }
 0x1cd   :  { %1120 = vmatmul.msk.f32.gmra.mxu2 %vm633_vm3, %v618_v59  ;;  %v885_v62 = vmax.f32 %v770_v57, %v853_v60 }
 0x1ce   :  { %v539_v0 = vpop.f32.mrf.mxu1 }
 0x1cf   :  { %v540_v1 = vadd.f32 %v1430_v47, %v539_v0  ;;  %917 = vxpose.xlu0.b32.cont [7/16] (narrow) %v885_v62, 8 }
 0x1d0   :  { %v772_v3 = vpop.f32.mrf.mxu2 }
 0x1d1   :  { %v587_v5 = vmul.f32 0.01, %v540_v1  ;;  %v773_v6 = vadd.f32 %v1503_v53, %v772_v3 }
 0x1d3   :  { %v619_v8 = vmax.f32 %v540_v1, %v587_v5  ;;  %v854_v9 = vmul.f32 0.01, %v773_v6 }
 0x1d5   :  { %1121 = vmatmul.msk.f32.gmra.mxu2 %vm633_vm3, %v619_v8  ;;  %v886_v2 = vmax.f32 %v773_v6, %v854_v9 }
 0x1d7   :  { %918 = vxpose.xlu0.b32.cont [8/16] (narrow) %v886_v2, 8 }
 0x1d8   :  { %v775_v12 = vpop.f32.mrf.mxu2 }
 0x1d9   :  { %v776_v14 = vadd.f32 %v1503_v53, %v775_v12 }
 0x1db   :  { %v855_v16 = vmul.f32 0.01, %v776_v14 }
 0x1dd   :  { %v887_v18 = vmax.f32 %v776_v14, %v855_v16 }
 0x1df   :  { %919 = vxpose.xlu0.b32.cont [9/16] (narrow) %v887_v18, 8 }
 0x1e0   :  { %v778_v20 = vpop.f32.mrf.mxu2 }
 0x1e1   :  { %v779_v22 = vadd.f32 %v1503_v53, %v778_v20 }
 0x1e3   :  { %v856_v24 = vmul.f32 0.01, %v779_v22 }
 0x1e5   :  { %v888_v27 = vmax.f32 %v779_v22, %v856_v24 }
 0x1e7   :  { %920 = vxpose.xlu0.b32.cont [10/16] (narrow) %v888_v27, 8 }
 0x1e8   :  { %v781_v29 = vpop.f32.mrf.mxu2 }
 0x1e9   :  { %v782_v30 = vadd.f32 %v1503_v53, %v781_v29 }
 0x1eb   :  { %v857_v31 = vmul.f32 0.01, %v782_v30 }
 0x1ed   :  { %v889_v25 = vmax.f32 %v782_v30, %v857_v31 }
 0x1ee   :  { %v826_v19 = vpop.f32.mrf.mxu3 }
 0x1ef   :  { %921 = vxpose.xlu0.b32.cont [11/16] (narrow) %v889_v25, 8  ;;  %v827_v29 = vadd.f32 %v1503_v53, %v826_v19 }
 0x1f0   :  { %v784_v32 = vpop.f32.mrf.mxu2 }
 0x1f1   :  { %v785_v33 = vadd.f32 %v1503_v53, %v784_v32  ;;  %v872_v31 = vmul.f32 0.01, %v827_v29 }
 0x1f3   :  { %v858_v34 = vmul.f32 0.01, %v785_v33 }
 0x1f5   :  { %v890_v35 = vmax.f32 %v785_v33, %v858_v34  ;;  %v904_v33 = vmax.f32 %v827_v29, %v872_v31 }
 0x1f7   :  { %922 = vxpose.xlu0.b32.cont [12/16] (narrow) %v890_v35, 8 }
 0x1f8   :  { %v787_v47 = vpop.f32.mrf.mxu2 }
 0x1f9   :  { %v788_v36 = vadd.f32 %v1503_v53, %v787_v47 }
 0x1fb   :  { %v859_v37 = vmul.f32 0.01, %v788_v36 }
 0x1fd   :  { %v891_v38 = vmax.f32 %v788_v36, %v859_v37 }
 0x1ff   :  { %923 = vxpose.xlu0.b32.cont [13/16] (narrow) %v891_v38, 8 }
 0x200   :  { %v790_v39 = vpop.f32.mrf.mxu2 }
 0x201   :  { %v791_v40 = vadd.f32 %v1503_v53, %v790_v39 }
 0x203   :  { %v860_v41 = vmul.f32 0.01, %v791_v40 }
 0x205   :  { %v892_v42 = vmax.f32 %v791_v40, %v860_v41 }
 0x206   :  { %v829_v26 = vpop.f32.mrf.mxu3 }
 0x207   :  { %924 = vxpose.xlu0.b32.cont [14/16] (narrow) %v892_v42, 8  ;;  %v830_v32 = vadd.f32 %v1503_v53, %v829_v26 }
 0x208   :  { %v793_v43 = vpop.f32.mrf.mxu2 }
 0x209   :  { %v794_v44 = vadd.f32 %v1503_v53, %v793_v43  ;;  %v873_v34 = vmul.f32 0.01, %v830_v32 }
 0x20b   :  { %v861_v45 = vmul.f32 0.01, %v794_v44  ;;  %v905_v36 = vmax.f32 %v830_v32, %v873_v34 }
 0x20d   :  { %v893_v46 = vmax.f32 %v794_v44, %v861_v45 }
 0x20f   :  { %925 = vxpose.xlu0.b32.cont [15/16] (narrow) %v893_v46, 8 }
 0x210   :  { %v796_v48 = vpop.f32.mrf.mxu2 }
 0x211   :  { %v797_v49 = vadd.f32 %v1503_v53, %v796_v48 }
 0x213   :  { %v862_v50 = vmul.f32 0.01, %v797_v49 }
 0x215   :  { %v894_v51 = vmax.f32 %v797_v49, %v862_v50 }
 0x217   :  { %926 = vxpose.xlu0.b32.end [16/16] (narrow) %v894_v51, 8 }
 0x218   :  { %v799_v52 = vpop.f32.mrf.mxu2 }
 0x219   :  { %v800_v54 = vadd.f32 %v1503_v53, %v799_v52 }
 0x21a   :  { %v832_v25 = vpop.f32.mrf.mxu3 }
 0x21b   :  { %v863_v55 = vmul.f32 0.01, %v800_v54  ;;  %v833_v47 = vadd.f32 %v1503_v53, %v832_v25 }
 0x21d   :  { %v895_v56 = vmax.f32 %v800_v54, %v863_v55  ;;  %v874_v37 = vmul.f32 0.01, %v833_v47 }
 0x21f   :  { %943 = vxpose.xlu1.b32.start [1/16] (narrow) %v895_v56, 8  ;;  %v906_v39 = vmax.f32 %v833_v47, %v874_v37  ;;  %v979_v56 = vpop.permute.xlu2 %978 }
 0x220   :  { %v802_v57 = vpop.f32.mrf.mxu2 }
 0x221   :  { %v803_v58 = vadd.f32 %v1503_v53, %v802_v57 }
 0x223   :  { %v864_v59 = vmul.f32 0.01, %v803_v58 }
 0x225   :  { %v896_v60 = vmax.f32 %v803_v58, %v864_v59 }
 0x227   :  { %944 = vxpose.xlu1.b32.cont [2/16] (narrow) %v896_v60, 8 }
 0x228   :  { %v805_v61 = vpop.f32.mrf.mxu2  ;;  %v835_v35 = vpop.f32.mrf.mxu3 }
 0x229   :  { %v806_v62 = vadd.f32 %v1503_v53, %v805_v61  ;;  %v836_v38 = vadd.f32 %v1503_v53, %v835_v35 }
 0x22b   :  { %v865_v63 = vmul.f32 0.01, %v806_v62  ;;  %v875_v41 = vmul.f32 0.01, %v836_v38 }
 0x22d   :  { %v897_v0 = vmax.f32 %v806_v62, %v865_v63  ;;  %v907_v43 = vmax.f32 %v836_v38, %v875_v41 }
 0x22f   :  { %945 = vxpose.xlu1.b32.cont [3/16] (narrow) %v897_v0, 8 }
 0x230   :  { %v808_v1 = vpop.f32.mrf.mxu2 }
 0x231   :  { %v809_v3 = vadd.f32 %v1503_v53, %v808_v1 }
 0x233   :  { %v866_v4 = vmul.f32 0.01, %v809_v3 }
 0x234   :  { %v838_v40 = vpop.f32.mrf.mxu3 }
 0x235   :  { %v898_v5 = vmax.f32 %v809_v3, %v866_v4  ;;  %v839_v42 = vadd.f32 %v1503_v53, %v838_v40 }
 0x237   :  { %946 = vxpose.xlu1.b32.cont [4/16] (narrow) %v898_v5, 8  ;;  %v876_v45 = vmul.f32 0.01, %v839_v42 }
 0x238   :  { %v811_v6 = vpop.f32.mrf.mxu2 }
 0x239   :  { %v812_v7 = vadd.f32 %v1503_v53, %v811_v6  ;;  %v908_v48 = vmax.f32 %v839_v42, %v876_v45 }
 0x23b   :  { %v867_v8 = vmul.f32 0.01, %v812_v7 }
 0x23c   :  { %v841_v44 = vpop.f32.mrf.mxu3 }
 0x23d   :  { %v899_v9 = vmax.f32 %v812_v7, %v867_v8  ;;  %v842_v46 = vadd.f32 %v1503_v53, %v841_v44 }
 0x23f   :  { %947 = vxpose.xlu1.b32.cont [5/16] (narrow) %v899_v9, 8  ;;  %v877_v49 = vmul.f32 0.01, %v842_v46 }
 0x240   :  { %v814_v2 = vpop.f32.mrf.mxu2 }
 0x241   :  { %v815_v12 = vadd.f32 %v1503_v53, %v814_v2  ;;  %v909_v52 = vmax.f32 %v842_v46, %v877_v49 }
 0x243   :  { %v868_v13 = vmul.f32 0.01, %v815_v12  ;;  %v927_v57 = vpop.trf.xlu0 }
 0x244   :  { %v844_v50 = vpop.f32.mrf.mxu3  ;;  %v981_v58 = vmul.f32 %v979_v56, %v927_v57 }
 0x245   :  { %v900_v14 = vmax.f32 %v815_v12, %v868_v13  ;;  %v845_v51 = vadd.f32 %v1503_v53, %v844_v50 }
 0x246   :  { %v983_v59 = vrot.slane %v981_v58, 4 }
 0x247   :  { %948 = vxpose.xlu1.b32.cont [6/16] (narrow) %v900_v14, 8  ;;  %v878_v54 = vmul.f32 0.01, %v845_v51 }
 0x248   :  { %v817_v15 = vpop.f32.mrf.mxu2  ;;  %v984_v60 = vadd.f32 %v983_v59, %v981_v58 }
 0x249   :  { %v818_v16 = vadd.f32 %v1503_v53, %v817_v15  ;;  %v910_v55 = vmax.f32 %v845_v51, %v878_v54 }
 0x24a   :  { %v985_v61 = vrot.slane %v984_v60, 2 }
 0x24b   :  { %v869_v17 = vmul.f32 0.01, %v818_v16 }
 0x24c   :  { %v986_v62 = vadd.f32 %v985_v61, %v984_v60 }
 0x24d   :  { %v901_v18 = vmax.f32 %v818_v16, %v869_v17  ;;  %v1011_v16 = vlaneseq }
 0x24e   :  { %v987_v0 = vrot.slane %v986_v62, 1 }
 0x24f   :  { %949 = vxpose.xlu1.b32.cont [7/16] (narrow) %v901_v18, 8  ;;  %vm1013_vm5 = vcmp.lt.s32.totalorder %v1011_v16, 256 }
 0x250   :  { %v820_v20 = vpop.f32.mrf.mxu2  ;;  %v988_v4 = vadd.f32 %v987_v0, %v986_v62 }
 0x251   :  { %v821_v21 = vadd.f32 %v1503_v53, %v820_v20 }
 0x253   :  { %v870_v22 = vmul.f32 0.01, %v821_v21 }
 0x255   :  { %v902_v23 = vmax.f32 %v821_v21, %v870_v22 }
 0x257   :  { %950 = vxpose.xlu1.b32.cont [8/16] (narrow) %v902_v23, 8 }
 0x258   :  { %v823_v24 = vpop.f32.mrf.mxu2 }
 0x259   :  { %v824_v27 = vadd.f32 %v1503_v53, %v823_v24  ;;  %v995_v53 = vsub.f32 0.0, %v988_v4 }
 0x25b   :  { %v871_v28 = vmul.f32 0.01, %v824_v27  ;;  %v997_v9 = vmul.f32 1.442695, %v995_v53 }
 0x25d   :  { %v903_v30 = vmax.f32 %v824_v27, %v871_v28  ;;  %1147 = vpow2.f32 %v997_v9 }
 0x25f   :  { %951 = vxpose.xlu1.b32.cont [9/16] (narrow) %v903_v30, 8 }
 0x263   :  { %v1148_v12 = vpop.eup %1147 }
 0x264   :  { %v1001_v14 = vadd.f32 1.0, %v1148_v12 }
 0x267   :  { %952 = vxpose.xlu1.b32.cont [10/16] (narrow) %v904_v33, 8 }
 0x26f   :  { %953 = vxpose.xlu1.b32.cont [11/16] (narrow) %v905_v36, 8 }
 0x277   :  { %954 = vxpose.xlu1.b32.cont [12/16] (narrow) %v906_v39, 8 }
 0x27e   :  { %1143 = vset.pattern.permute.xlu0 %v1181_v11 }
 0x27f   :  { %955 = vxpose.xlu1.b32.cont [13/16] (narrow) %v907_v43, 8 }
 0x287   :  { %956 = vxpose.xlu1.b32.cont [14/16] (narrow) %v908_v48, 8 }
 0x28f   :  { %957 = vxpose.xlu1.b32.cont [15/16] (narrow) %v909_v52, 8 }
 0x297   :  { %958 = vxpose.xlu1.b32.end [16/16] (narrow) %v910_v55, 8 }
 0x2c3   :  { %v959_v63 = vpop.trf.xlu1 }
 0x2c4   :  { %v982_v1 = vmul.f32 %v979_v56, %v959_v63 }
 0x2c6   :  { %v989_v3 = vrot.slane %v982_v1, 4 }
 0x2c8   :  { %v990_v5 = vadd.f32 %v989_v3, %v982_v1 }
 0x2ca   :  { %v991_v6 = vrot.slane %v990_v5, 2 }
 0x2cc   :  { %v992_v7 = vadd.f32 %v991_v6, %v990_v5 }
 0x2ce   :  { %v993_v8 = vrot.slane %v992_v7, 1 }
 0x2d0   :  { %v994_v10 = vadd.f32 %v993_v8, %v992_v7 }
 0x2d2   :  { %v996_v2 = vsub.f32 0.0, %v994_v10 }
 0x2d4   :  { %v999_v11 = vmul.f32 1.442695, %v996_v2 }
 0x2d6   :  { %1149 = vpow2.f32 %v999_v11 }
 0x2dc   :  { %v1150_v13 = vpop.eup %1149 }
 0x2dd   :  { %v1002_v15 = vadd.f32 1.0, %v1150_v13 }
 0x2df   :  { %1151 = vrcp.f32 %v1002_v15 }
 0x2e0   :  { %1153 = vrcp.f32 %v1001_v14 }
 0x2e5   :  { %v1152_v17 = vpop.eup %1151 }
 0x2e6   :  { %v1007_v18 = vrot.slane %v1152_v17, 7  ;;  %v1154_v19 = vpop.eup %1153 }
 0x2e8   :  { %v1009_v20 = vsel %vm1008_vm4, %v1154_v19, %v1007_v18 }
 0x2e9   :  { %1015 = vst.msk [vmem:[#allocation2] sm:$0x3] %vm1013_vm5, %v1009_v20 }
 0x2ea   :  { %1026 = dma.vmem_to_hbm [thread:$0]  %s1022_s22, 32, %s1024_s24, [#allocation3]  }
 0x2eb   :  { %1179 = dma.done.wait [#allocation3], 32  }
 0x2ec   :  { %1180 = vsyncadd [#allocation3], 4294967264 }
 0x2ed   :  { %1031 = vsyncpa [#allocation3], 1 }

</bundles_post_ra>
